<compile_context>
chip_gen: v7x
topology: tpu7x:2x2x1
jax: 0.10.0
libtpu: 0.0.40
codegen_flags: <defaults>
</compile_context>

<pallas_src>
import jax
import jax.numpy as jnp
from jax.experimental import pallas as pl
from jax.experimental.pallas import tpu as pltpu


def _copy_kernel(x_ref, o_ref):
    # Hot path: pass-through of the current (block_m, K) lane-dense tile.
    o_ref[...] = x_ref[...]


# ~6 MiB per tile -> (in + out) x 2 double-buffers = ~24 MiB VMEM.
# Safe under the explicit 48 MiB scoped limit below on every generation
# (v5e/v6e physical VMEM 128 MiB, v7x physical VMEM 64 MiB).
_TARGET_TILE_BYTES = 6 * 1024 * 1024
_VMEM_LIMIT_BYTES = 48 << 20


def _pick_lane_width(total):
    """Largest convenient multiple of 128 dividing the element count."""
    for cand in (4096, 2048, 1024, 512, 256, 128):
        if total % cand == 0:
            return cand
    return 0


def _pick_block_rows(m_rows, k_cols, itemsize):
    """Rows per tile: ~_TARGET_TILE_BYTES, multiple of 8, dividing M if possible."""
    target_rows = max(1, _TARGET_TILE_BYTES // max(1, k_cols * itemsize))
    if m_rows <= target_rows:
        # Whole row dimension fits in one tile (block dim == full array dim is legal).
        return m_rows
    hi = max(8, (target_rows // 8) * 8)
    lo = max(8, hi // 2)
    # Prefer a multiple of 8 that divides M so every grid step is a full,
    # unmasked tile (no padded last step / masked vst on the tail).
    for bm in range(hi, lo - 1, -8):
        if m_rows % bm == 0:
            return bm
    return hi


@jax.jit
def correlogram_pooling_3d(x):
    """Identity forward pass of CorrelogramPooling3D as a Pallas TPU kernel.

    Args:
      x: array of shape (N, C, H, W) — NCHW layout, any dtype.
    Returns:
      array identical to x (same shape, dtype, values).

    NOTE: the reference forward is a pure identity, so the truly optimal
    implementation is `return x` (no kernel, no HBM traffic).  The Pallas
    copy below is a well-tiled, lane-dense streaming pass-through kept for
    demonstration; callers that only need the identity can skip it.
    """
    orig_shape = x.shape
    total = int(x.size)
    itemsize = jnp.dtype(x.dtype).itemsize

    K = _pick_lane_width(total)
    if K == 0 or total == 0:
        # Element count not a multiple of 128 (or empty input): bypass the
        # kernel rather than build a whole-array block that could exceed the
        # scoped VMEM limit.  Identity semantics are preserved exactly.
        return x

    M = total // K
    block_m = _pick_block_rows(M, K, itemsize)
    grid_m = pl.cdiv(M, block_m)

    # NCHW is contiguous, so this reshape is free layout plumbing; the minor
    # dim K is a large multiple of 128 -> full-width `vst`, no masked stores.
    flat = x.reshape(M, K)
    out = pl.pallas_call(
        _copy_kernel,
        out_shape=jax.ShapeDtypeStruct((M, K), x.dtype),
        grid_spec=pltpu.PrefetchScalarGridSpec(
            num_scalar_prefetch=0,
            grid=(grid_m,),
            in_specs=[pl.BlockSpec((block_m, K), lambda i: (i, 0))],
            out_specs=pl.BlockSpec((block_m, K), lambda i: (i, 0)),
        ),
        compiler_params=pltpu.CompilerParams(
            dimension_semantics=("parallel",),
            vmem_limit_bytes=_VMEM_LIMIT_BYTES,
        ),
        # No input_output_aliases: without donation it would force XLA to add
        # a defensive copy of x in front of the aliased call (extra HBM pass).
    )(flat)
    return out.reshape(orig_shape)


if __name__ == "__main__":
    key = jax.random.PRNGKey(0)
    # Small deterministic NCHW feature map.
    x = jax.random.normal(key, (2, 4, 16, 16), dtype=jnp.float32)

    y = jax.block_until_ready(correlogram_pooling_3d(x))

    # Verify identity semantics exactly.
    assert y.shape == x.shape and y.dtype == x.dtype
    assert bool(jnp.all(y == x))

    print("KERNEL_OK")
</pallas_src>

<mosaic_0001>
module attributes {stable_mosaic.version = 11 : i64} {
  func.func @_copy_kernel(%arg0: i32, %arg1: memref<1x2048xf32, #tpu.memory_space<vmem>>, %arg2: memref<1x2048xf32, #tpu.memory_space<vmem>>) attributes {dimension_semantics = [#tpu.dimension_semantics<parallel>], iteration_bounds = array<i64: 1>, scalar_prefetch = 0 : i64, scratch_operands = 0 : i64, tpu.core_type = #tpu.core_type<tc>, window_params = [{transform_indices = @transform_0, window_bounds = array<i64: 1, 2048>}, {transform_indices = @transform_1, window_bounds = array<i64: 1, 2048>}]} {
    %c0 = arith.constant 0 : index
    %c0_0 = arith.constant 0 : index
    %0 = vector.load %arg1[%c0, %c0_0] : memref<1x2048xf32, #tpu.memory_space<vmem>>, vector<1x2048xf32>
    %c0_1 = arith.constant 0 : index
    %c0_2 = arith.constant 0 : index
    %1 = vector.load %arg2[%c0_1, %c0_2] : memref<1x2048xf32, #tpu.memory_space<vmem>>, vector<1x2048xf32>
    tpu.vector_store %arg2[%c0_1, %c0_2], %0 {strides = array<i32>} : memref<1x2048xf32, #tpu.memory_space<vmem>>, vector<1x2048xf32>,
    return
  }
  func.func @transform_0(%arg0: i32) -> (i32, i32) {
    %c0_i32 = arith.constant 0 : i32
    %c0_i32_0 = arith.constant 0 : i32
    return %arg0, %c0_i32 : i32, i32
  }
  func.func @transform_1(%arg0: i32) -> (i32, i32) {
    %c0_i32 = arith.constant 0 : i32
    %c0_i32_0 = arith.constant 0 : i32
    return %arg0, %c0_i32 : i32, i32
  }
}

</mosaic_0001>

<bundles_post_ra>
// kernel: correlogram_pooling_3d.1
= control target key start
LH: loop header
LB: loop body
LE: loop exit
PB: predicated region body
PF: predicated region fallthrough
CT: control target
= control target key end

     0   :  { %s38_s0 = inlined_call_operand.vmem [shape: f32[1,2048], index: 0, kind: input, shape index: {}]   ;;  %s39_s1 = inlined_call_operand.vmem [shape: f32[1,2048], index: 1, kind: output, shape index: {}]  }
   0x1   :  { %v8_v0 = vld [vmem:[%s38_s0] sm:$0xff]  ;;  %v9_v1 = vld [vmem:[%s38_s0 + $0x8] sm:$0xff] }
   0x2   :  { %10 = vst [vmem:[%s39_s1] sm:$0xff] %v8_v0  ;;  %11 = vst [vmem:[%s39_s1 + $0x8] sm:$0xff] %v9_v1 }

</bundles_post_ra>
